<compile_context>
chip_gen: v5e
topology: v5e:2x2
jax: 0.10.0
libtpu: 0.0.40
codegen_flags: <defaults>
</compile_context>

<pallas_src>
import functools

import jax
import jax.numpy as jnp
from jax.experimental import pallas as pl
from jax.experimental.pallas import tpu as pltpu


def _round_up(x, m):
    return (x + m - 1) // m * m


def _fused_head_kernel(x_ref, w_ref, b_ref, out_ref):
    # One wide MXU matmul covers both heads (cls scores + bbox deltas).
    acc = jnp.dot(x_ref[...], w_ref[...], preferred_element_type=jnp.float32)
    out_ref[...] = (acc + b_ref[...]).astype(out_ref.dtype)


@functools.partial(jax.jit, static_argnames=("row_tile", "compute_dtype"))
def fast_rcnn_predictor(x, w_cls, b_cls, w_bbox, b_bbox, *,
                        row_tile=512, compute_dtype=jnp.bfloat16):
    """Pallas-backed forward pass matching FastRCNNPredictor.forward.

    Args:
      x:       (N, C) or (N, C, 1, 1)
      w_cls:   (C, num_classes)        -- transposed vs. torch nn.Linear
      b_cls:   (num_classes,)
      w_bbox:  (C, num_classes * 4)    -- transposed vs. torch nn.Linear
      b_bbox:  (num_classes * 4,)
      row_tile:      max ROI rows per grid step (multiple of 8).
      compute_dtype: matmul input dtype (bf16 by default, f32 accumulation).
    Returns:
      (scores (N, num_classes), bbox_deltas (N, num_classes * 4))
    """
    if x.ndim == 4:
        assert list(x.shape[2:]) == [1, 1]
    x2d = x.reshape(x.shape[0], -1)  # == x.flatten(start_dim=1)
    out_dtype = x2d.dtype

    n, c = x2d.shape
    nc = w_cls.shape[1]
    nb = w_bbox.shape[1]
    n_out = nc + nb

    # Fuse the two heads: W = [W_cls | W_bbox], b = [b_cls | b_bbox].
    w = jnp.concatenate([w_cls, w_bbox], axis=1)            # (C, n_out)
    b = jnp.concatenate([b_cls, b_bbox], axis=0)             # (n_out,)

    # Pad lane dims to multiples of 128 (lane-dense, full MXU columns) and the
    # ROI dim to a sublane-aligned row tile.  Zero padding is exact.
    c_pad = _round_up(c, 128)
    o_pad = _round_up(n_out, 128)
    tm = min(row_tile, _round_up(n, 8))
    tm = _round_up(tm, 8)
    n_pad = _round_up(n, tm)

    x_p = jnp.pad(x2d, ((0, n_pad - n), (0, c_pad - c))).astype(compute_dtype)
    w_p = jnp.pad(w, ((0, c_pad - c), (0, o_pad - n_out))).astype(compute_dtype)
    b_p = jnp.pad(b, (0, o_pad - n_out)).reshape(1, o_pad).astype(jnp.float32)

    compute_bytes = jnp.dtype(compute_dtype).itemsize
    out_bytes = jnp.dtype(out_dtype).itemsize

    # VMEM budget: double-buffered x/out tiles + resident weights/bias + slack.
    vmem_need = (2 * tm * c_pad * compute_bytes
                 + 2 * c_pad * o_pad * compute_bytes
                 + 2 * o_pad * 4
                 + 2 * tm * o_pad * out_bytes)
    vmem_limit = int(min(max(2 * vmem_need, 4 * 1024 * 1024), 64 * 1024 * 1024))

    cost = pl.CostEstimate(
        flops=2 * n_pad * c_pad * o_pad,
        transcendentals=0,
        bytes_accessed=int(x_p.size * compute_bytes
                           + w_p.size * compute_bytes
                           + b_p.size * 4
                           + n_pad * o_pad * out_bytes),
    )

    out_p = pl.pallas_call(
        _fused_head_kernel,
        out_shape=jax.ShapeDtypeStruct((n_pad, o_pad), out_dtype),
        grid=(n_pad // tm,),
        in_specs=[
            pl.BlockSpec((tm, c_pad), lambda i: (i, 0)),      # x row tile
            pl.BlockSpec((c_pad, o_pad), lambda i: (0, 0)),   # fused weights
            pl.BlockSpec((1, o_pad), lambda i: (0, 0)),       # fused bias
        ],
        out_specs=pl.BlockSpec((tm, o_pad), lambda i: (i, 0)),
        compiler_params=pltpu.CompilerParams(
            dimension_semantics=("parallel",),
            vmem_limit_bytes=vmem_limit),
        cost_estimate=cost,
    )(x_p, w_p, b_p)

    out = out_p[:n]
    scores = out[:, :nc]
    bbox_deltas = out[:, nc:nc + nb]
    return scores, bbox_deltas


def init_params(key, in_channels, num_classes, dtype=jnp.float32):
    """Deterministic synthetic init mirroring nn.Linear parameter shapes."""
    k1, k2, k3, k4 = jax.random.split(key, 4)
    bound = 1.0 / jnp.sqrt(in_channels)
    # Stored already transposed: (in, out).
    w_cls = jax.random.uniform(k1, (in_channels, num_classes), dtype,
                               minval=-bound, maxval=bound)
    b_cls = jax.random.uniform(k2, (num_classes,), dtype,
                               minval=-bound, maxval=bound)
    w_bbox = jax.random.uniform(k3, (in_channels, num_classes * 4), dtype,
                                minval=-bound, maxval=bound)
    b_bbox = jax.random.uniform(k4, (num_classes * 4,), dtype,
                                minval=-bound, maxval=bound)
    return w_cls, b_cls, w_bbox, b_bbox


if __name__ == "__main__":
    key = jax.random.PRNGKey(0)
    k_x, k_p = jax.random.split(key)

    batch = 8
    in_channels = 32
    num_classes = 5  # including background

    # 4-D input (N, C, 1, 1) to exercise the flatten path, as in Fast R-CNN
    # where x comes from ROI pooling + the box head.
    x = jax.random.normal(k_x, (batch, in_channels, 1, 1), jnp.float32)
    w_cls, b_cls, w_bbox, b_bbox = init_params(k_p, in_channels, num_classes)

    # Reference in plain JAX (f32).
    x2d = x.reshape(batch, -1)
    ref_scores = x2d @ w_cls + b_cls
    ref_bbox = x2d @ w_bbox + b_bbox

    # Default fast path: bf16 inputs, f32 accumulation.
    scores, bbox_deltas = fast_rcnn_predictor(x, w_cls, b_cls, w_bbox, b_bbox)
    jax.block_until_ready((scores, bbox_deltas))
    assert scores.shape == (batch, num_classes)
    assert bbox_deltas.shape == (batch, num_classes * 4)
    assert jnp.allclose(scores, ref_scores, atol=5e-2, rtol=5e-2)
    assert jnp.allclose(bbox_deltas, ref_bbox, atol=5e-2, rtol=5e-2)

    # Full-precision path: bit-faithful f32 matmul.
    scores32, bbox32 = fast_rcnn_predictor(
        x, w_cls, b_cls, w_bbox, b_bbox, compute_dtype=jnp.float32)
    jax.block_until_ready((scores32, bbox32))
    assert jnp.allclose(scores32, ref_scores, atol=1e-4, rtol=1e-4)
    assert jnp.allclose(bbox32, ref_bbox, atol=1e-4, rtol=1e-4)

    print("KERNEL_OK")
</pallas_src>

<mosaic_0001>
module attributes {stable_mosaic.version = 11 : i64} {
  func.func @_fused_head_kernel(%arg0: i32, %arg1: memref<8x128xbf16, #tpu.memory_space<vmem>>, %arg2: memref<128x128xbf16, #tpu.memory_space<vmem>>, %arg3: memref<1x128xf32, #tpu.memory_space<vmem>>, %arg4: memref<8x128xf32, #tpu.memory_space<vmem>>) attributes {dimension_semantics = [#tpu.dimension_semantics<parallel>], iteration_bounds = array<i64: 1>, scalar_prefetch = 0 : i64, scratch_operands = 0 : i64, tpu.core_type = #tpu.core_type<tc>, window_params = [{transform_indices = @transform_0, window_bounds = array<i64: 8, 128>}, {pipeline_mode = #tpu.pipeline_mode<synchronous>, transform_indices = @transform_1, window_bounds = array<i64: 128, 128>}, {pipeline_mode = #tpu.pipeline_mode<synchronous>, transform_indices = @transform_2, window_bounds = array<i64: 1, 128>}, {transform_indices = @transform_3, window_bounds = array<i64: 8, 128>}]} {
    %c0 = arith.constant 0 : index
    %c0_0 = arith.constant 0 : index
    %0 = vector.load %arg1[%c0, %c0_0] : memref<8x128xbf16, #tpu.memory_space<vmem>>, vector<8x128xbf16>
    %c0_1 = arith.constant 0 : index
    %c0_2 = arith.constant 0 : index
    %1 = vector.load %arg2[%c0_1, %c0_2] : memref<128x128xbf16, #tpu.memory_space<vmem>>, vector<128x128xbf16>
    %cst = arith.constant dense<0.000000e+00> : vector<8x128xf32>
    %2 = tpu.matmul %0, %1, %cst {dimension_numbers = #tpu.dot_dimension_numbers<[1], [0], [0], [1], [0, 0, 1, 1], [], []>} : vector<8x128xbf16>, vector<128x128xbf16>, vector<8x128xf32> -> vector<8x128xf32>
    %c0_3 = arith.constant 0 : index
    %c0_4 = arith.constant 0 : index
    %3 = vector.load %arg3[%c0_3, %c0_4] : memref<1x128xf32, #tpu.memory_space<vmem>>, vector<1x128xf32>
    %4 = vector.broadcast %3 : vector<1x128xf32> to vector<8x128xf32>
    %5 = arith.addf %2, %4 : vector<8x128xf32>
    %c0_5 = arith.constant 0 : index
    %c0_6 = arith.constant 0 : index
    %6 = vector.load %arg4[%c0_5, %c0_6] : memref<8x128xf32, #tpu.memory_space<vmem>>, vector<8x128xf32>
    tpu.vector_store %arg4[%c0_5, %c0_6], %5 {strides = array<i32>} : memref<8x128xf32, #tpu.memory_space<vmem>>, vector<8x128xf32>,
    return
  }
  func.func @transform_0(%arg0: i32) -> (i32, i32) {
    %c0_i32 = arith.constant 0 : i32
    %c0_i32_0 = arith.constant 0 : i32
    return %arg0, %c0_i32 : i32, i32
  }
  func.func @transform_1(%arg0: i32) -> (i32, i32) {
    %c0_i32 = arith.constant 0 : i32
    %c0_i32_0 = arith.constant 0 : i32
    %c0_i32_1 = arith.constant 0 : i32
    return %c0_i32, %c0_i32_0 : i32, i32
  }
  func.func @transform_2(%arg0: i32) -> (i32, i32) {
    %c0_i32 = arith.constant 0 : i32
    %c0_i32_0 = arith.constant 0 : i32
    %c0_i32_1 = arith.constant 0 : i32
    return %c0_i32, %c0_i32_0 : i32, i32
  }
  func.func @transform_3(%arg0: i32) -> (i32, i32) {
    %c0_i32 = arith.constant 0 : i32
    %c0_i32_0 = arith.constant 0 : i32
    return %arg0, %c0_i32 : i32, i32
  }
}

</mosaic_0001>

<bundles_post_ra>
// kernel: fast_rcnn_predictor.1
= control target key start
LH: loop header
LB: loop body
LE: loop exit
PB: predicated region body
PF: predicated region fallthrough
CT: control target
= control target key end

     0   :  { %s195_s1 = inlined_call_operand.vmem [shape: bf16[128,128], index: 1, kind: input, shape index: {}]   ;;  %s196_s2 = inlined_call_operand.vmem [shape: f32[1,128], index: 2, kind: input, shape index: {}]   ;;  %s197_s0 = inlined_call_operand.vmem [shape: bf16[8,128], index: 0, kind: input, shape index: {}]   ;;  %s198_s3 = inlined_call_operand.vmem [shape: f32[8,128], index: 3, kind: output, shape index: {}]  }
   0x1   :  { %v140_v0 = vld [vmem:[%s195_s1 + $0x38] sm:$0xff]  ;;  %v139_v1 = vld [vmem:[%s195_s1 + $0x30] sm:$0xff]  ;;  %v138_v2 = vld [vmem:[%s195_s1 + $0x28] sm:$0xff] }
   0x2   :  { %83 = vmatpush.bf16.msra.mxu0 %v140_v0  ;;  %v137_v3 = vld [vmem:[%s195_s1 + $0x20] sm:$0xff]  ;;  %v136_v4 = vld [vmem:[%s195_s1 + $0x18] sm:$0xff]  ;;  %v135_v5 = vld [vmem:[%s195_s1 + $0x10] sm:$0xff] }
   0x3   :  { %v134_v6 = vld [vmem:[%s195_s1 + $0x8] sm:$0xff]  ;;  %v133_v7 = vld [vmem:[%s195_s1] sm:$0xff] }
   0x4   :  { %v14_v8 = vld [vmem:[%s197_s0] sm:$0xf] }
   0x5   :  { %v141_v9 = vld [vmem:[%s196_s2] ss:$0 sm:$0xff] }
   0x6   :  { %84 = vmatpush.bf16.msra.mxu0 %v139_v1 }
   0xa   :  { %85 = vmatpush.bf16.msra.mxu0 %v138_v2 }
   0xe   :  { %86 = vmatpush.bf16.msra.mxu0 %v137_v3 }
  0x12   :  { %87 = vmatpush.bf16.msra.mxu0 %v136_v4 }
  0x16   :  { %88 = vmatpush.bf16.msra.mxu0 %v135_v5 }
  0x1a   :  { %89 = vmatpush.bf16.msra.mxu0 %v134_v6 }
  0x1e   :  { %90 = vmatpush.bf16.msra.mxu0 %v133_v7 }
  0x21   :  { %91 = vmatmul.bf16.vlgmr.msra.gmra.mxu0 %v14_v8 }
  0x9e   :  { %v92_v10 = vpop.f32.mrf.mxu0 }
  0x9f   :  { %v93_v11 = vadd.f32 %v141_v9, %v92_v10 }
  0xa1   :  { %96 = vst [vmem:[%s198_s3] sm:$0xff] %v93_v11 }
  0xa6   :  { %v94_v12 = vpop.f32.mrf.mxu0 }

</bundles_post_ra>
